<compile_context>
chip_gen: v7x
topology: tpu7x:2x2x1
jax: 0.10.0
libtpu: 0.0.40
codegen_flags: <defaults>
</compile_context>

<pallas_src>
import math

import jax
import jax.numpy as jnp
import numpy as np
from jax.experimental import pallas as pl
from jax.experimental.pallas import tpu as pltpu


def _round_up(a, b):
    return ((a + b - 1) // b) * b


def _cdiv(a, b):
    return (a + b - 1) // b


# -----------------------------------------------------------------------------
# Pallas kernel
# -----------------------------------------------------------------------------
def _build_frustum_kernel(mode, num_bins, depth_min, depth_max, oob_val=-2.0):
    """Per-tile kernel. Static depth-discretization constants are baked in."""
    eps = 1e-8  # kornia convert_points_from_homogeneous eps
    nb = float(num_bins)

    if mode == "LID":
        lid_s = 1.0 / (nb - 1.0)
        lid_o = -1.0 / (nb - 1.0) - 1.0
    elif mode == "SID":
        log_span = math.log(1.0 + depth_max) - math.log(1.0 + depth_min)
        sid_s = 2.0 * nb / ((nb - 1.0) * log_span)
        sid_o = -sid_s * math.log(1.0 + depth_min) - 1.0
    elif mode != "UD":
        raise NotImplementedError(mode)

    def kernel(params_ref, coords_ref, out_ref):
        # params_ref : SMEM (B*16,) f32, per-batch layout at offset 16*b:
        #   [0:4]  P row 0 pre-scaled by 2/(W-1)   (u numerator)
        #   [4:8]  P row 1 pre-scaled by 2/(H-1)   (v numerator)
        #   [8:12] P row 2                          (homogeneous depth pz)
        #   [12]   depth-bin affine a, [13] depth-bin affine b (batch dep.)
        # coords_ref : VMEM (3, TR, 128) f32 : voxel-center x / y / z planes
        # out_ref    : VMEM (1, 3, TR, 128) f32 : normalized (u, v, depth_bin)
        b = pl.program_id(1)
        base = b * 16

        x = coords_ref[0]        # (TR, 128)
        y = coords_ref[1]
        z = coords_ref[2]

        def apply_row(i):
            return (params_ref[base + 4 * i + 0] * x
                    + params_ref[base + 4 * i + 1] * y
                    + params_ref[base + 4 * i + 2] * z
                    + params_ref[base + 4 * i + 3])

        pu = apply_row(0)        # already scaled by 2/(W-1)
        pv = apply_row(1)        # already scaled by 2/(H-1)
        pz = apply_row(2)        # raw homogeneous depth

        # kornia convert_points_from_homogeneous semantics.  EUP approx
        # reciprocal + one Newton-Raphson step (~1e-7 rel error) replaces the
        # long VALU full-precision divide chain.
        d = pz + eps
        r = pl.reciprocal(d, approx=True)
        r = r * (2.0 - d * r)                         # one NR refinement
        scale = jnp.where(jnp.abs(pz) > eps, r, 1.0)

        un = pu * scale - 1.0
        vn = pv * scale - 1.0

        # transform_utils.bin_depths + normalize, folded into an affine on pz.
        d_a = params_ref[base + 12]
        d_b = params_ref[base + 13]
        if mode == "UD":
            dn = pz * d_a + d_b
        elif mode == "LID":
            dn = lid_s * jnp.sqrt(pz * d_a + d_b) + lid_o
        else:  # SID
            dn = sid_s * jnp.log(pz + d_b) + sid_o

        out_ref[0, 0] = jnp.where(jnp.isfinite(un), un, oob_val)
        out_ref[0, 1] = jnp.where(jnp.isfinite(vn), vn, oob_val)
        out_ref[0, 2] = jnp.where(jnp.isfinite(dn), dn, oob_val)

    return kernel


# -----------------------------------------------------------------------------
# Module wrapper
# -----------------------------------------------------------------------------
class FrustumGridGeneratorPallas:
    def __init__(self, grid_size, pc_range, disc_cfg, bev_aug=False,
                 max_tile_rows=1024):
        # TODO(synk): bev_aug path (torch.linalg.inv(bda) applied to the lidar
        # grid) is not implemented; only the default bev_aug=False forward is
        # supported.
        if bev_aug:
            raise NotImplementedError("bev_aug=True not supported in this kernel")
        self.out_of_bounds_val = -2.0
        self.disc_cfg = dict(disc_cfg)

        X, Y, Z = int(grid_size[0]), int(grid_size[1]), int(grid_size[2])
        self.X, self.Y, self.Z = X, Y, Z
        gs = np.asarray(grid_size, np.float32)
        pc = np.asarray(pc_range, np.float32).reshape(2, 3)
        self.pc_min = jnp.asarray(pc[0])
        self.pc_max = jnp.asarray(pc[1])
        voxel_size = (pc[1] - pc[0]) / gs
        self.voxel_size = jnp.asarray(voxel_size)

        # --- static voxel-center grid --------------------------------------
        xs = np.arange(X, dtype=np.float32)
        ys = np.arange(Y, dtype=np.float32)
        zs = np.arange(Z, dtype=np.float32)
        vox = np.stack(np.meshgrid(xs, ys, zs, indexing="ij"), axis=-1) + 0.5
        self.voxel_grid = jnp.asarray(vox[None])               # (1, X, Y, Z, 3)

        # --- tile selection -------------------------------------------------
        # Fewest grid steps whose blocks fit the per-generation VMEM budget,
        # with balanced tiles (padding bounded by ~8 rows per tile) and at
        # least 2 tiles when possible so both v7x TensorCores get work at B=1.
        N = X * Y * Z
        self.N = N
        R = _cdiv(N, 128)                                      # rows of 128 lanes
        R8 = _round_up(R, 8)
        max_tr = max(8, _round_up(int(max_tile_rows), 8))
        num_tiles = max(1, _cdiv(R8, max_tr))
        if num_tiles == 1 and R8 >= 16:
            num_tiles = 2                                      # v7x megacore @ B=1
        TR = _round_up(_cdiv(R8, num_tiles), 8)
        R_pad = TR * num_tiles
        self.TR, self.R_pad, self.num_tiles = TR, R_pad, num_tiles

        # Explicit scoped-VMEM limit: coords block + out block, double-buffered,
        # plus headroom.  Capped at 64 MiB (v7x physical per-TC VMEM).
        block_bytes = 3 * TR * 128 * 4
        self._vmem_limit = int(min(max(4 * block_bytes + (8 << 20), 16 << 20),
                                   64 << 20))

        # Lane-dense coordinate slab (3, R_pad, 128): planes x, y, z.
        # TODO(synk): for very large grids the slab could be generated in-kernel
        # (iota + div/mod) or stored in a narrower dtype to cut input traffic.
        flat = vox.reshape(N, 3).T                              # (3, N)
        coords = np.zeros((3, R_pad * 128), np.float32)
        coords[:, :N] = flat                                    # pad tail = 0 (sliced off)
        self.coords = jnp.asarray(coords.reshape(3, R_pad, 128))

        # grid_to_lidar unprojection (4, 4)
        vx, vy, vz = [float(v) for v in voxel_size]
        mx, my, mz = [float(v) for v in pc[0]]
        self.grid_to_lidar = jnp.array(
            [[vx, 0.0, 0.0, mx],
             [0.0, vy, 0.0, my],
             [0.0, 0.0, vz, mz],
             [0.0, 0.0, 0.0, 1.0]], dtype=jnp.float32)

        self._mode = disc_cfg["mode"]
        self._num_bins = int(disc_cfg["num_bins"])
        self._depth_min = float(disc_cfg["depth_min"])
        self._depth_max = float(disc_cfg["depth_max"])
        self._kernel = _build_frustum_kernel(
            mode=self._mode, num_bins=self._num_bins,
            depth_min=self._depth_min, depth_max=self._depth_max,
            oob_val=self.out_of_bounds_val)

    def __call__(self, lidar_to_cam, cam_to_img, image_shape, channel_major=False):
        """
        lidar_to_cam: (B, 4, 4) f32, cam_to_img: (B, 3, 4) f32,
        image_shape: (B, 2) int [H, W]
        Returns: (B, X, Y, Z, 3) f32 normalized frustum sampling grid, or the
        transpose-free channel-major (B, 3, X, Y, Z) if channel_major=True.
        """
        B = lidar_to_cam.shape[0]
        lidar_to_cam = lidar_to_cam.astype(jnp.float32)
        cam_to_img = cam_to_img.astype(jnp.float32)

        # Compose grid -> lidar -> camera -> image projection: (B, 3, 4)
        M = jnp.einsum("bij,jk->bik", lidar_to_cam, self.grid_to_lidar)
        P = jnp.einsum("bij,bjk->bik", cam_to_img, M)

        img_max = jnp.max(image_shape, axis=0).astype(jnp.float32)   # [H, W]
        hm1 = img_max[0] - 1.0
        wm1 = img_max[1] - 1.0
        cam_off = cam_to_img[:, 2, 3]

        # Fold the [-1, 1] normalization into the numerator rows (scales the
        # numerators only; pz / the eps guard are untouched).
        row_u = P[:, 0, :] * (2.0 / wm1)
        row_v = P[:, 1, :] * (2.0 / hm1)
        row_z = P[:, 2, :]

        nb = float(self._num_bins)
        dmin, dmax = self._depth_min, self._depth_max
        if self._mode == "UD":
            bin_size = (dmax - dmin) / nb
            k = 2.0 / ((nb - 1.0) * bin_size)
            d_a = jnp.full((B,), k, jnp.float32)
            d_b = -(dmin + cam_off) * k - 1.0
        elif self._mode == "LID":
            bin_size = 2.0 * (dmax - dmin) / (nb * (1.0 + nb))
            d_a = jnp.full((B,), 8.0 / bin_size, jnp.float32)
            d_b = 1.0 - 8.0 * (cam_off + dmin) / bin_size
        else:  # SID
            d_a = jnp.zeros((B,), jnp.float32)
            d_b = 1.0 - cam_off

        params = jnp.concatenate(
            [row_u, row_v, row_z, d_a[:, None], d_b[:, None],
             jnp.zeros((B, 2), jnp.float32)], axis=1)                # (B, 16)
        params = params.reshape(-1)                                  # (B*16,) SMEM-flat

        TR = self.TR
        out = pl.pallas_call(
            self._kernel,
            out_shape=jax.ShapeDtypeStruct((B, 3, self.R_pad, 128), jnp.float32),
            grid=(self.num_tiles, B),                 # B innermost: coords tile reused
            in_specs=[
                pl.BlockSpec(memory_space=pltpu.MemorySpace.SMEM),   # params (flat)
                pl.BlockSpec((3, TR, 128), lambda t, b: (0, t, 0)),  # coords
            ],
            out_specs=pl.BlockSpec((1, 3, TR, 128), lambda t, b: (b, 0, t, 0)),
            compiler_params=pltpu.CompilerParams(
                dimension_semantics=("parallel", "parallel"),
                vmem_limit_bytes=self._vmem_limit),
        )(params, self.coords)

        out = out.reshape(B, 3, self.R_pad * 128)[:, :, :self.N]
        out = out.reshape(B, 3, self.X, self.Y, self.Z)
        if channel_major:
            # TODO(synk): consumers (grid_sample) that can read channel-major
            # should use this path; the transpose below re-moves the whole
            # result through HBM with a lane-hostile minor dim of 3.
            return out
        return out.transpose(0, 2, 3, 4, 1)


# -----------------------------------------------------------------------------
# Pure-JAX reference (faithful to torch/kornia path) for a sanity check
# -----------------------------------------------------------------------------
def reference_forward(voxel_grid, grid_to_lidar, lidar_to_cam, cam_to_img,
                      image_shape, disc_cfg, oob_val=-2.0):
    eps = 1e-8
    B = lidar_to_cam.shape[0]

    def transform_points(Mat, pts):
        pts_h = jnp.concatenate([pts, jnp.ones_like(pts[..., :1])], axis=-1)
        out_h = jnp.einsum("bij,bxyzj->bxyzi", Mat, pts_h)
        w = out_h[..., -1:]
        scale = jnp.where(jnp.abs(w) > eps, 1.0 / (w + eps), jnp.ones_like(w))
        return out_h[..., :3] * scale

    vox = jnp.broadcast_to(voxel_grid, (B,) + voxel_grid.shape[1:])
    VG = jnp.broadcast_to(grid_to_lidar[None], (B, 4, 4))
    lidar = transform_points(VG, vox)
    cam = transform_points(lidar_to_cam, lidar)

    cam_h = jnp.concatenate([cam, jnp.ones_like(cam[..., :1])], axis=-1)
    pt = jnp.einsum("bij,bxyzj->bxyzi", cam_to_img, cam_h)
    z = pt[..., -1:]
    scale = jnp.where(jnp.abs(z) > eps, 1.0 / (z + eps), jnp.ones_like(z))
    img = pt[..., :2] * scale
    depth = pt[..., 2] - cam_to_img[:, None, None, None, 2, 3]

    mode = disc_cfg["mode"]
    num_bins = disc_cfg["num_bins"]
    dmin = disc_cfg["depth_min"]
    dmax = disc_cfg["depth_max"]
    if mode == "UD":
        idx = (depth - dmin) / ((dmax - dmin) / num_bins)
    elif mode == "LID":
        bin_size = 2.0 * (dmax - dmin) / (num_bins * (1 + num_bins))
        idx = -0.5 + 0.5 * jnp.sqrt(1.0 + 8.0 * (depth - dmin) / bin_size)
    else:
        idx = num_bins * (jnp.log(1.0 + depth) - math.log(1.0 + dmin)) / (
            math.log(1.0 + dmax) - math.log(1.0 + dmin))

    frustum = jnp.concatenate([img, idx[..., None]], axis=-1)
    shape_max = jnp.max(image_shape, axis=0)
    frustum_shape = jnp.concatenate(
        [jnp.array([num_bins], dtype=image_shape.dtype), shape_max])
    denom = jnp.flip(frustum_shape, axis=0).astype(jnp.float32) - 1.0  # [W, H, D]
    norm = frustum / denom * 2.0 - 1.0
    norm = jnp.where(jnp.isfinite(norm), norm, oob_val)
    return norm


# -----------------------------------------------------------------------------
# Main
# -----------------------------------------------------------------------------
if __name__ == "__main__":
    B = 2
    grid_size = [16, 16, 8]                       # [X, Y, Z] -> 2048 voxels (2 tiles)
    pc_range = [2.0, -30.08, -3.0, 46.8, 30.08, 1.0]
    disc_cfg = dict(mode="LID", num_bins=64, depth_min=2.0, depth_max=46.8)

    key = jax.random.PRNGKey(0)
    k1, k2, k3 = jax.random.split(key, 3)

    # lidar -> camera: rigid transform (last row exactly [0,0,0,1])
    R = jnp.array([[0.0, -1.0, 0.0],
                   [0.0, 0.0, -1.0],
                   [1.0, 0.0, 0.0]], jnp.float32)
    t = jnp.array([0.0, -0.08, -0.27], jnp.float32)
    t_b = t[None, :] + 0.05 * jax.random.normal(k1, (B, 3), jnp.float32)
    lidar_to_cam = (jnp.zeros((B, 4, 4), jnp.float32)
                    .at[:, :3, :3].set(R)
                    .at[:, :3, 3].set(t_b)
                    .at[:, 3, 3].set(1.0))

    # camera -> image: pinhole intrinsics (3, 4)
    fx = 200.0 + 5.0 * jax.random.normal(k2, (B,), jnp.float32)
    fy = 200.0 + 5.0 * jax.random.normal(k3, (B,), jnp.float32)
    cam_to_img = (jnp.zeros((B, 3, 4), jnp.float32)
                  .at[:, 0, 0].set(fx)
                  .at[:, 1, 1].set(fy)
                  .at[:, 0, 2].set(128.0)
                  .at[:, 1, 2].set(96.0)
                  .at[:, 2, 2].set(1.0)
                  .at[:, 0, 3].set(0.1)
                  .at[:, 1, 3].set(-0.05)
                  .at[:, 2, 3].set(0.003))

    image_shape = jnp.array([[192, 256], [190, 250]], dtype=jnp.int32)  # [H, W]

    gen = FrustumGridGeneratorPallas(grid_size, pc_range, disc_cfg, bev_aug=False)
    frustum_grid = gen(lidar_to_cam, cam_to_img, image_shape)
    frustum_grid = jax.block_until_ready(frustum_grid)

    assert frustum_grid.shape == (B, grid_size[0], grid_size[1], grid_size[2], 3)
    assert frustum_grid.dtype == jnp.float32

    ref = reference_forward(gen.voxel_grid, gen.grid_to_lidar, lidar_to_cam,
                            cam_to_img, image_shape, disc_cfg)
    np.testing.assert_allclose(np.asarray(frustum_grid), np.asarray(ref),
                               rtol=1e-4, atol=1e-4)

    # Channel-major (transpose-free) path must agree too.
    cm = jax.block_until_ready(gen(lidar_to_cam, cam_to_img, image_shape,
                                   channel_major=True))
    np.testing.assert_allclose(np.asarray(cm.transpose(0, 2, 3, 4, 1)),
                               np.asarray(ref), rtol=1e-4, atol=1e-4)

    print("KERNEL_OK")
</pallas_src>

<mosaic_0001>
module attributes {stable_mosaic.version = 11 : i64} {
  func.func @kernel(%arg0: i32, %arg1: i32, %arg2: memref<32xf32, #tpu.memory_space<smem>>, %arg3: memref<3x8x128xf32, #tpu.memory_space<vmem>>, %arg4: memref<1x3x8x128xf32, #tpu.memory_space<vmem>>) attributes {dimension_semantics = [#tpu.dimension_semantics<parallel>, #tpu.dimension_semantics<parallel>], iteration_bounds = array<i64: 2, 2>, scalar_prefetch = 0 : i64, scratch_operands = 0 : i64, tpu.core_type = #tpu.core_type<tc>, window_params = [{transform_indices = @transform_0, window_bounds = array<i64: 32>}, {transform_indices = @transform_1, window_bounds = array<i64: 3, 8, 128>}, {transform_indices = @transform_2, window_bounds = array<i64: 1, 3, 8, 128>}]} {
    %c16_i32 = arith.constant 16 : i32
    %0 = arith.muli %arg1, %c16_i32 : i32
    %c0 = arith.constant 0 : index
    %c0_0 = arith.constant 0 : index
    %c0_1 = arith.constant 0 : index
    %1 = vector.load %arg3[%c0, %c0_0, %c0_1] : memref<3x8x128xf32, #tpu.memory_space<vmem>>, vector<1x8x128xf32>
    %2 = vector.shape_cast %1 : vector<1x8x128xf32> to vector<8x128xf32>
    %c1 = arith.constant 1 : index
    %c0_2 = arith.constant 0 : index
    %c0_3 = arith.constant 0 : index
    %3 = vector.load %arg3[%c1, %c0_2, %c0_3] : memref<3x8x128xf32, #tpu.memory_space<vmem>>, vector<1x8x128xf32>
    %4 = vector.shape_cast %3 : vector<1x8x128xf32> to vector<8x128xf32>
    %c2 = arith.constant 2 : index
    %c0_4 = arith.constant 0 : index
    %c0_5 = arith.constant 0 : index
    %5 = vector.load %arg3[%c2, %c0_4, %c0_5] : memref<3x8x128xf32, #tpu.memory_space<vmem>>, vector<1x8x128xf32>
    %6 = vector.shape_cast %5 : vector<1x8x128xf32> to vector<8x128xf32>
    %c0_i32 = arith.constant 0 : i32
    %7 = arith.addi %0, %c0_i32 : i32
    %c0_i32_6 = arith.constant 0 : i32
    %8 = arith.addi %7, %c0_i32_6 : i32
    %9 = arith.index_cast %8 : i32 to index
    %10 = memref.load %arg2[%9] : memref<32xf32, #tpu.memory_space<smem>>
    %11 = vector.broadcast %10 : f32 to vector<8x128xf32>
    %12 = arith.mulf %11, %2 : vector<8x128xf32>
    %c0_i32_7 = arith.constant 0 : i32
    %13 = arith.addi %0, %c0_i32_7 : i32
    %c1_i32 = arith.constant 1 : i32
    %14 = arith.addi %13, %c1_i32 : i32
    %15 = arith.index_cast %14 : i32 to index
    %16 = memref.load %arg2[%15] : memref<32xf32, #tpu.memory_space<smem>>
    %17 = vector.broadcast %16 : f32 to vector<8x128xf32>
    %18 = arith.mulf %17, %4 : vector<8x128xf32>
    %19 = arith.addf %12, %18 : vector<8x128xf32>
    %c0_i32_8 = arith.constant 0 : i32
    %20 = arith.addi %0, %c0_i32_8 : i32
    %c2_i32 = arith.constant 2 : i32
    %21 = arith.addi %20, %c2_i32 : i32
    %22 = arith.index_cast %21 : i32 to index
    %23 = memref.load %arg2[%22] : memref<32xf32, #tpu.memory_space<smem>>
    %24 = vector.broadcast %23 : f32 to vector<8x128xf32>
    %25 = arith.mulf %24, %6 : vector<8x128xf32>
    %26 = arith.addf %19, %25 : vector<8x128xf32>
    %c0_i32_9 = arith.constant 0 : i32
    %27 = arith.addi %0, %c0_i32_9 : i32
    %c3_i32 = arith.constant 3 : i32
    %28 = arith.addi %27, %c3_i32 : i32
    %29 = arith.index_cast %28 : i32 to index
    %30 = memref.load %arg2[%29] : memref<32xf32, #tpu.memory_space<smem>>
    %31 = vector.broadcast %30 : f32 to vector<8x128xf32>
    %32 = arith.addf %26, %31 : vector<8x128xf32>
    %c4_i32 = arith.constant 4 : i32
    %33 = arith.addi %0, %c4_i32 : i32
    %c0_i32_10 = arith.constant 0 : i32
    %34 = arith.addi %33, %c0_i32_10 : i32
    %35 = arith.index_cast %34 : i32 to index
    %36 = memref.load %arg2[%35] : memref<32xf32, #tpu.memory_space<smem>>
    %37 = vector.broadcast %36 : f32 to vector<8x128xf32>
    %38 = arith.mulf %37, %2 : vector<8x128xf32>
    %c4_i32_11 = arith.constant 4 : i32
    %39 = arith.addi %0, %c4_i32_11 : i32
    %c1_i32_12 = arith.constant 1 : i32
    %40 = arith.addi %39, %c1_i32_12 : i32
    %41 = arith.index_cast %40 : i32 to index
    %42 = memref.load %arg2[%41] : memref<32xf32, #tpu.memory_space<smem>>
    %43 = vector.broadcast %42 : f32 to vector<8x128xf32>
    %44 = arith.mulf %43, %4 : vector<8x128xf32>
    %45 = arith.addf %38, %44 : vector<8x128xf32>
    %c4_i32_13 = arith.constant 4 : i32
    %46 = arith.addi %0, %c4_i32_13 : i32
    %c2_i32_14 = arith.constant 2 : i32
    %47 = arith.addi %46, %c2_i32_14 : i32
    %48 = arith.index_cast %47 : i32 to index
    %49 = memref.load %arg2[%48] : memref<32xf32, #tpu.memory_space<smem>>
    %50 = vector.broadcast %49 : f32 to vector<8x128xf32>
    %51 = arith.mulf %50, %6 : vector<8x128xf32>
    %52 = arith.addf %45, %51 : vector<8x128xf32>
    %c4_i32_15 = arith.constant 4 : i32
    %53 = arith.addi %0, %c4_i32_15 : i32
    %c3_i32_16 = arith.constant 3 : i32
    %54 = arith.addi %53, %c3_i32_16 : i32
    %55 = arith.index_cast %54 : i32 to index
    %56 = memref.load %arg2[%55] : memref<32xf32, #tpu.memory_space<smem>>
    %57 = vector.broadcast %56 : f32 to vector<8x128xf32>
    %58 = arith.addf %52, %57 : vector<8x128xf32>
    %c8_i32 = arith.constant 8 : i32
    %59 = arith.addi %0, %c8_i32 : i32
    %c0_i32_17 = arith.constant 0 : i32
    %60 = arith.addi %59, %c0_i32_17 : i32
    %61 = arith.index_cast %60 : i32 to index
    %62 = memref.load %arg2[%61] : memref<32xf32, #tpu.memory_space<smem>>
    %63 = vector.broadcast %62 : f32 to vector<8x128xf32>
    %64 = arith.mulf %63, %2 : vector<8x128xf32>
    %c8_i32_18 = arith.constant 8 : i32
    %65 = arith.addi %0, %c8_i32_18 : i32
    %c1_i32_19 = arith.constant 1 : i32
    %66 = arith.addi %65, %c1_i32_19 : i32
    %67 = arith.index_cast %66 : i32 to index
    %68 = memref.load %arg2[%67] : memref<32xf32, #tpu.memory_space<smem>>
    %69 = vector.broadcast %68 : f32 to vector<8x128xf32>
    %70 = arith.mulf %69, %4 : vector<8x128xf32>
    %71 = arith.addf %64, %70 : vector<8x128xf32>
    %c8_i32_20 = arith.constant 8 : i32
    %72 = arith.addi %0, %c8_i32_20 : i32
    %c2_i32_21 = arith.constant 2 : i32
    %73 = arith.addi %72, %c2_i32_21 : i32
    %74 = arith.index_cast %73 : i32 to index
    %75 = memref.load %arg2[%74] : memref<32xf32, #tpu.memory_space<smem>>
    %76 = vector.broadcast %75 : f32 to vector<8x128xf32>
    %77 = arith.mulf %76, %6 : vector<8x128xf32>
    %78 = arith.addf %71, %77 : vector<8x128xf32>
    %c8_i32_22 = arith.constant 8 : i32
    %79 = arith.addi %0, %c8_i32_22 : i32
    %c3_i32_23 = arith.constant 3 : i32
    %80 = arith.addi %79, %c3_i32_23 : i32
    %81 = arith.index_cast %80 : i32 to index
    %82 = memref.load %arg2[%81] : memref<32xf32, #tpu.memory_space<smem>>
    %83 = vector.broadcast %82 : f32 to vector<8x128xf32>
    %84 = arith.addf %78, %83 : vector<8x128xf32>
    %cst = arith.constant 9.99999993E-9 : f32
    %85 = vector.broadcast %cst : f32 to vector<8x128xf32>
    %86 = arith.addf %84, %85 : vector<8x128xf32>
    %87 = tpu.reciprocal %86 {approx = true} : vector<8x128xf32> -> vector<8x128xf32>
    %88 = arith.mulf %86, %87 : vector<8x128xf32>
    %cst_24 = arith.constant 2.000000e+00 : f32
    %89 = vector.broadcast %cst_24 : f32 to vector<8x128xf32>
    %90 = arith.subf %89, %88 : vector<8x128xf32>
    %91 = arith.mulf %87, %90 : vector<8x128xf32>
    %92 = math.absf %84 : vector<8x128xf32>
    %cst_25 = arith.constant 9.99999993E-9 : f32
    %93 = vector.broadcast %cst_25 : f32 to vector<8x128xf32>
    %94 = arith.cmpf ogt, %92, %93 : vector<8x128xf32>
    %cst_26 = arith.constant 1.000000e+00 : f32
    %95 = vector.broadcast %cst_26 : f32 to vector<8x128xf32>
    %96 = arith.select %94, %91, %95 : vector<8x128xi1>, vector<8x128xf32>
    %97 = arith.mulf %32, %96 : vector<8x128xf32>
    %cst_27 = arith.constant 1.000000e+00 : f32
    %98 = vector.broadcast %cst_27 : f32 to vector<8x128xf32>
    %99 = arith.subf %97, %98 : vector<8x128xf32>
    %100 = arith.mulf %58, %96 : vector<8x128xf32>
    %cst_28 = arith.constant 1.000000e+00 : f32
    %101 = vector.broadcast %cst_28 : f32 to vector<8x128xf32>
    %102 = arith.subf %100, %101 : vector<8x128xf32>
    %c12_i32 = arith.constant 12 : i32
    %103 = arith.addi %0, %c12_i32 : i32
    %104 = arith.index_cast %103 : i32 to index
    %105 = memref.load %arg2[%104] : memref<32xf32, #tpu.memory_space<smem>>
    %c13_i32 = arith.constant 13 : i32
    %106 = arith.addi %0, %c13_i32 : i32
    %107 = arith.index_cast %106 : i32 to index
    %108 = memref.load %arg2[%107] : memref<32xf32, #tpu.memory_space<smem>>
    %109 = vector.broadcast %105 : f32 to vector<8x128xf32>
    %110 = arith.mulf %84, %109 : vector<8x128xf32>
    %111 = vector.broadcast %108 : f32 to vector<8x128xf32>
    %112 = arith.addf %110, %111 : vector<8x128xf32>
    %113 = math.sqrt %112 : vector<8x128xf32>
    %cst_29 = arith.constant 0.0158730168 : f32
    %114 = vector.broadcast %cst_29 : f32 to vector<8x128xf32>
    %115 = arith.mulf %114, %113 : vector<8x128xf32>
    %cst_30 = arith.constant -1.01587307 : f32
    %116 = vector.broadcast %cst_30 : f32 to vector<8x128xf32>
    %117 = arith.addf %115, %116 : vector<8x128xf32>
    %118 = tpu.weird %99 : vector<8x128xf32> -> vector<8x128xi1>
    %cst_31 = arith.constant dense<true> : vector<8x128xi1>
    %119 = arith.xori %118, %cst_31 : vector<8x128xi1>
    %cst_32 = arith.constant -2.000000e+00 : f32
    %120 = vector.broadcast %cst_32 : f32 to vector<8x128xf32>
    %121 = arith.select %119, %99, %120 : vector<8x128xi1>, vector<8x128xf32>
    %c0_33 = arith.constant 0 : index
    %c0_34 = arith.constant 0 : index
    %c0_35 = arith.constant 0 : index
    %c0_36 = arith.constant 0 : index
    %122 = vector.load %arg4[%c0_33, %c0_34, %c0_35, %c0_36] : memref<1x3x8x128xf32, #tpu.memory_space<vmem>>, vector<1x1x8x128xf32>
    %123 = vector.shape_cast %122 : vector<1x1x8x128xf32> to vector<8x128xf32>
    %124 = vector.shape_cast %121 : vector<8x128xf32> to vector<1x1x8x128xf32>
    tpu.vector_store %arg4[%c0_33, %c0_34, %c0_35, %c0_36], %124 {strides = array<i32>} : memref<1x3x8x128xf32, #tpu.memory_space<vmem>>, vector<1x1x8x128xf32>,
    %125 = tpu.weird %102 : vector<8x128xf32> -> vector<8x128xi1>
    %cst_37 = arith.constant dense<true> : vector<8x128xi1>
    %126 = arith.xori %125, %cst_37 : vector<8x128xi1>
    %cst_38 = arith.constant -2.000000e+00 : f32
    %127 = vector.broadcast %cst_38 : f32 to vector<8x128xf32>
    %128 = arith.select %126, %102, %127 : vector<8x128xi1>, vector<8x128xf32>
    %c0_39 = arith.constant 0 : index
    %c1_40 = arith.constant 1 : index
    %c0_41 = arith.constant 0 : index
    %c0_42 = arith.constant 0 : index
    %129 = vector.load %arg4[%c0_39, %c1_40, %c0_41, %c0_42] : memref<1x3x8x128xf32, #tpu.memory_space<vmem>>, vector<1x1x8x128xf32>
    %130 = vector.shape_cast %129 : vector<1x1x8x128xf32> to vector<8x128xf32>
    %131 = vector.shape_cast %128 : vector<8x128xf32> to vector<1x1x8x128xf32>
    tpu.vector_store %arg4[%c0_39, %c1_40, %c0_41, %c0_42], %131 {strides = array<i32>} : memref<1x3x8x128xf32, #tpu.memory_space<vmem>>, vector<1x1x8x128xf32>,
    %132 = tpu.weird %117 : vector<8x128xf32> -> vector<8x128xi1>
    %cst_43 = arith.constant dense<true> : vector<8x128xi1>
    %133 = arith.xori %132, %cst_43 : vector<8x128xi1>
    %cst_44 = arith.constant -2.000000e+00 : f32
    %134 = vector.broadcast %cst_44 : f32 to vector<8x128xf32>
    %135 = arith.select %133, %117, %134 : vector<8x128xi1>, vector<8x128xf32>
    %c0_45 = arith.constant 0 : index
    %c2_46 = arith.constant 2 : index
    %c0_47 = arith.constant 0 : index
    %c0_48 = arith.constant 0 : index
    %136 = vector.load %arg4[%c0_45, %c2_46, %c0_47, %c0_48] : memref<1x3x8x128xf32, #tpu.memory_space<vmem>>, vector<1x1x8x128xf32>
    %137 = vector.shape_cast %136 : vector<1x1x8x128xf32> to vector<8x128xf32>
    %138 = vector.shape_cast %135 : vector<8x128xf32> to vector<1x1x8x128xf32>
    tpu.vector_store %arg4[%c0_45, %c2_46, %c0_47, %c0_48], %138 {strides = array<i32>} : memref<1x3x8x128xf32, #tpu.memory_space<vmem>>, vector<1x1x8x128xf32>,
    return
  }
  func.func @transform_0(%arg0: i32, %arg1: i32) -> i32 {
    %c0_i32 = arith.constant 0 : i32
    %c0_i32_0 = arith.constant 0 : i32
    return %c0_i32 : i32
  }
  func.func @transform_1(%arg0: i32, %arg1: i32) -> (i32, i32, i32) {
    %c0_i32 = arith.constant 0 : i32
    %c0_i32_0 = arith.constant 0 : i32
    %c0_i32_1 = arith.constant 0 : i32
    return %c0_i32, %arg0, %c0_i32_0 : i32, i32, i32
  }
  func.func @transform_2(%arg0: i32, %arg1: i32) -> (i32, i32, i32, i32) {
    %c0_i32 = arith.constant 0 : i32
    %c0_i32_0 = arith.constant 0 : i32
    %c0_i32_1 = arith.constant 0 : i32
    return %arg1, %c0_i32, %arg0, %c0_i32_0 : i32, i32, i32, i32
  }
}

</mosaic_0001>

<bundles_post_ra>
// kernel: tpu_custom_call.1
= control target key start
LH: loop header
LB: loop body
LE: loop exit
PB: predicated region body
PF: predicated region fallthrough
CT: control target
= control target key end

     0   :  { %s1032_s0 = inlined_call_operand.hbm [shape: f32[32], index: 0, kind: input, shape index: {}]   ;;  %s1033_s1 = inlined_call_operand.hbm [shape: f32[3,16,128], index: 1, kind: input, shape index: {}]   ;;  %s1034_s2 = inlined_call_operand.hbm [shape: f32[2,3,16,128], index: 2, kind: output, shape index: {}]  }
   0x1   :  { %1043 = sst [smem:[#allocation15_spill]] %s1032_s0 }
   0x2   :  { %1044 = sst [smem:[#allocation16_spill]] %s1033_s1 }
   0x3   :  { %7 = vsyncpa [#allocation5], 0 }
   0x4   :  { %8 = vsyncpa [#allocation3], 0 }
   0x5   :  { %10 = vsyncpa [#allocation3 + $0x1], 0 }
   0x6   :  { %11 = vsyncpa [#allocation4], 0 }
   0x7   :  { %13 = vsyncpa [#allocation4 + $0x1], 0  ;;  %s744_s9 = smov 0   ;;  %s746_s10 = smov 0  }
   0x8   :  { %s748_s11 = smov 0   ;;  %s750_s12 = smov 0  }
   0x9   :  { %s752_s13 = smov 0   ;;  %s754_s14 = smov 0  }
   0xa   :  { %s756_s15 = smov 0   ;;  %s758_s16 = smov 0  }
   0xb   :  { %s760_s17 = smov 0   ;;  %s762_s18 = smov 0  }
   0xc   :  { %s764_s19 = smov 0  }
   0xd LB: > { %1045 = sst [smem:[#allocation11_spill]] %s709_s17  ;;  %s402_s20 = sadd.s32 4294967295, %s717_s19   ;;  %s717_s19 = sphi %s764_s19, %s19_s19   ;;  %s713_s18 = sphi %s762_s18, %s1077_s18   ;;  %s709_s17 = sphi %s760_s17, %s1076_s17   ;;  %s705_s16 = sphi %s758_s16, %s1075_s16   ;;  %s701_s15 = sphi %s756_s15, %s1066_s15   ;;  %s697_s14 = sphi %s754_s14, %s1074_s14   ;;  %s693_s13 = sphi %s752_s13, %s1073_s13   ;;  %s689_s12 = sphi %s750_s12, %s1072_s12   ;;  %s685_s11 = sphi %s748_s11, %s1071_s11   ;;  %s681_s10 = sphi %s746_s10, %s1070_s10   ;;  %s677_s9 = sphi %s744_s9, %s1069_s9  }
   0xe   : > { %s403_s21 = sadd.s32 4294967294, %s717_s19   ;;  %p66_p0 = scmp.ne.s32.totalorder %s697_s14, %s693_s13 }
   0xf   : > { %p67_p1 = scmp.eq.s32.totalorder %s717_s19, 0  ;;  %p72_p2 = scmp.ne.s32.totalorder %s693_s13, %s689_s12 }
  0x10   : > { %p804_p3 = scmp.eq.s32.totalorder %s402_s20, 0  ;;  %p97_p5 = scmp.ne.s32.totalorder %s685_s11, %s681_s10 }
  0x11   : > { %p809_p4 = por %p67_p1, %p66_p0  ;;  %p98_p7 = scmp.eq.s32.totalorder %s402_s20, 3 }
  0x12   : > { %s1046_s23 = scalar_select %p804_p3, 1, 0 }
  0x13   : > { %p817_p6 = por %p804_p3, %p72_p2  ;;  %p103_p8 = scmp.ne.s32.totalorder %s681_s10, %s677_s9 }
  0x14   : > { %p104_p9 = scmp.eq.s32.totalorder %s403_s21, 3  ;;  %p823_p10 = por %p98_p7, %p97_p5 }
  0x15   : > { %s1048_s26 = scalar_select %p817_p6, 1, 0 }
  0x16   : > { %s1049_s27 = scalar_select %p823_p10, 1, 0 }
  0x17   : > { %p404_p11 = scmp.ge.s32.totalorder %s717_s19, 1  ;;  %p828_p12 = por %p104_p9, %p103_p8 }
  0x18   : > { %p111_p13 = scmp.lt.s32.totalorder %s717_s19, 5  ;;  %p445_p1 = scmp.lt.s32.totalorder %s717_s19, 4 }
  0x19   : > { %s1050_s28 = scalar_select %p828_p12, 1, 0 }
  0x1a   : > { %p833_p0 = pnand %p404_p11, %p111_p13  ;;  %p842_p6 = pnand %p445_p1, %p809_p4 }
  0x1b   : > { %1051 = sst [smem:[#allocation12_spill]] %s1050_s28  ;;  %s28_s3 = sadd.s32 1, %s709_s17 }
  0x1c   : > { %p432_p2 = pneg %p833_p0  ;;  %p849_p7 = scmp.ge.s32.totalorder %s28_s3, 2 }
  0x1d   : > { %s1055_s0 = sld [smem:[#allocation15_spill]] }
  0x1e   : > { %p433_p5 = pnand %p432_p2, %p804_p3 }
  0x20   : > { %p550_p9 = pneg %p433_p5 }
  0x23   : > { %s548_s7 = scalar_lea.hbm %s1055_s0, 16 }
  0x24   : > { %p549_p8 = scmp.ne.s32.totalorder %s1055_s0, %s548_s7  ;;  %p555_p13 = scmp.lt.u32.totalorder %s548_s7, %s1055_s0 }
  0x26   : > { %p551_p4 = pnand %p550_p9, %p549_p8 }
  0x28   : > { %p552_p11 = pneg %p551_p4 }
  0x2a   : > { %p557_p1 = pnand %p555_p13, %p552_p11 }
  0x2c   : > { %560 = shalt.err (!%p557_p1)
}
  0x2d   : > { %s719_s25 = smov [#allocation2]   ;;  %s1079_s3 = smov (%p849_p7, %s28_s3), 0 }
  0x2e   : > { %435 = dma.hbm_to_smem (!%p433_p5), %s1055_s0, 16, %s719_s25, [#allocation5]  }
  0x2f   : > { %1056 = sst [smem:[#allocation13_spill]] %s1079_s3  ;;  %s31_s5 = sadd.s32 1, %s713_s18 }
  0x30   : > { %s133_s6 = sand.u32 1, %s697_s14   ;;  %s1081_s5 = smov (!%p849_p7, %s31_s5), %s713_s18 }
  0x31   : > { %s82_s22 = ssub.s32 %s709_s17, %s1079_s3  ;;  %p33_p2 = scmp.ge.s32.totalorder %s1081_s5, 2 }
  0x32   : > { %s420_s24 = smul.u32 24, %s133_s6  ;;  %s407_s7 = sshll.u32 %s713_s18, 7 }
  0x33   : > { %s1083_s5 = smov (%p33_p2, %s1081_s5), 0  ;;  %s1058_s1 = sld [smem:[#allocation16_spill]] }
  0x34   : > { %1057 = sst [smem:[#allocation14_spill]] %s1083_s5  ;;  %s56_s4 = ssub.s32 %s713_s18, %s1083_s5 }
  0x35   : > { %s137_s21 = scalar_lea.vmem [#allocation6], %s420_s24  ;;  %p57_p5 = scmp.eq.s32.totalorder %s56_s4, 0 }
  0x36   : > { %s143_s25 = sshll.u32 %s137_s21, 4  ;;  %s84_s0 = sor.u32 %s82_s22, %s56_s4  ;;  %s886_s25 = int_to_ptr.vmem [resolvable:$true] %s143_s25 }
  0x37   : > { %p85_p7 = scmp.eq.s32.totalorder %s84_s0, 0  ;;  %s1059_s3 = sadd.s32 1, %s697_s14 }
  0x38   : > { %s891_s17 = scalar_select %p57_p5, %s697_s14, %s1059_s3  }
  0x39   : > { %s882_s20 = scalar_lea.hbm %s1058_s1, %s407_s7  ;;  %s1060_s28 = sadd.s32 1, %s685_s11 }
  0x3a   : > { %s896_s8 = scalar_select %p85_p7, %s685_s11, %s1060_s28  }
  0x3b   : > { %s898_s7 = scalar_lea.sflag [#allocation3], %s133_s6  ;;  %s561_s12 = scalar_lea.hbm %s882_s20, 384 }
  0x3c   : > { %p562_p8 = scmp.ne.s32.totalorder %s882_s20, %s561_s12  ;;  %p563_p9 = pneg %p842_p6 }
  0x3d   : > { %s566_s24 = scalar_lea.hbm %s1058_s1, 768  ;;  %p567_p13 = scmp.lt.u32.totalorder %s882_s20, %s1058_s1 }
  0x3e   : > { %p564_p4 = pnand %p563_p9, %p562_p8  ;;  %p568_p1 = scmp.lt.u32.totalorder %s566_s24, %s561_s12 }
  0x3f   : > { %p570_p5 = scmp.lt.u32.totalorder %s561_s12, %s882_s20 }
  0x40   : > { %p565_p11 = pneg %p564_p4  ;;  %p569_p2 = por %p568_p1, %p567_p13 }
  0x42   : > { %p571_p7 = por %p570_p5, %p569_p2 }
  0x44   : > { %p572_p12 = pnand %p571_p7, %p565_p11 }
  0x46   : > { %575 = shalt.err (!%p572_p12)
}
  0x47   : > { %s576_s28 = scalar_lea.vmem %s886_s25, 384  ;;  %s720_s6 = smov [#allocation6]  }
  0x48   : > { %p577_p8 = scmp.ne.s32.totalorder %s886_s25, %s576_s28  ;;  %s581_s21 = sshll.u32 %s720_s6, 4  ;;  %s582_s21 = int_to_ptr.vmem [resolvable:$false] %s581_s21 }
  0x49   : > { %s583_s22 = scalar_lea.vmem %s582_s21, 768  ;;  %p584_p3 = scmp.lt.s32.totalorder %s886_s25, %s582_s21 }
  0x4a   : > { %p579_p4 = pnand %p577_p8, %p563_p9  ;;  %p585_p13 = scmp.lt.s32.totalorder %s583_s22, %s576_s28 }
  0x4c   : > { %p580_p10 = pneg %p579_p4  ;;  %p586_p1 = por %p585_p13, %p584_p3 }
  0x4e   : > { %p587_p2 = pnand %p586_p1, %p580_p10 }
  0x50   : > { %590 = shalt.err (!%p587_p2)
}
  0x51   : > { %s721_s12 = smov 256   ;;  %s722_s0 = smov 128  }
  0x52   : > { %s723_s24 = smov 8   ;;  %155 = sbr.rel (%p833_p0) target bundleno = 159 (0x9f), region = 28 }
  0x53   : > { %439 = dma.hbm_to_vmem [thread:$0]  (!%p842_p6), %s882_s20, 384, %s886_s25, %s898_s7, %s721_s12, %s722_s0, %s723_s24  }
  0x54   : > { %p1061_p12 = scmp.ne.s32.totalorder (!%p833_p0), %s1046_s23, 0 }
  0x59   : > { %664 = dma.done.wait (%p1061_p12), [#allocation5], 16  }
  0x5a   : > { %666 = vsyncadd (%p1061_p12), [#allocation5], 4294967280  ;;  %s161_s4 = sand.u32 1, %s693_s13   ;;  %p1062_p3 = scmp.ne.s32.totalorder %s1048_s26, 0 }
  0x5b   : > { %s421_s3 = smul.u32 24, %s161_s4  ;;  %s162_s28 = scalar_lea.sflag [#allocation3], %s161_s4 }
  0x5d   : > { %s165_s6 = scalar_lea.vmem [#allocation6], %s421_s3 }
  0x5e   : > { %668 = dma.done.wait (%p1062_p3), %s162_s28, 384  }
  0x5f   : > { %670 = vsyncadd (%p1062_p3), %s162_s28, 4294966912 }
  0x60   : > { %170 = sfence }
  0x61   : > { %s938_s29 = sshll.u32 %s701_s15, 4  ;;  %v188_v0 = vld [vmem:[%s165_s6] sm:$0xff]  ;;  %v411_v1 = vld [vmem:[%s165_s6 + $0x8] sm:$0xff]  ;;  %v412_v2 = vld [vmem:[%s165_s6 + $0x10] sm:$0xff]  ;;  %vm724_vm6 = vmmov 1   ;;  %p1063_p10 = scmp.ne.s32.totalorder %s1049_s27, 0 }
  0x62   : > { %s228_s23 = sadd.s32 8, %s938_s29  ;;  %s232_s20 = sadd.s32 9, %s938_s29 }
  0x63   : > { %s229_s30 = sld [smem:[#allocation2 + %s228_s23]]  ;;  %s237_s7 = sadd.s32 10, %s938_s29 }
  0x64   : > { %s233_s25 = sld [smem:[#allocation2 + %s232_s20]]  ;;  %s242_s21 = sadd.s32 11, %s938_s29 }
  0x65   : > { %s238_s26 = sld [smem:[#allocation2 + %s237_s7]]  ;;  %s258_s12 = sadd.s32 12, %s938_s29 }
  0x66   : > { %s243_s22 = sld [smem:[#allocation2 + %s242_s21]]  ;;  %s260_s0 = sadd.s32 13, %s938_s29 }
  0x67   : > { %s196_s24 = sadd.s32 1, %s938_s29  ;;  %s259_s4 = sld [smem:[#allocation2 + %s258_s12]] }
  0x68   : > { %s210_s3 = sadd.s32 4, %s938_s29  ;;  %s949_s28 = sld [smem:[#allocation2 + %s938_s29]] }
  0x69   : > { %v230_v3 = vstv %s229_s30  ;;  %s261_s23 = sld [smem:[#allocation2 + %s260_s0]]  ;;  %s214_s7 = sadd.s32 5, %s938_s29 }
  0x6a   : > { %v231_v4 = vmul.f32 %v230_v3, %v188_v0  ;;  %v234_v5 = vstv %s233_s25  ;;  %s197_s20 = sld [smem:[#allocation2 + %s196_s24]]  ;;  %s201_s5 = sadd.s32 2, %s938_s29 }
  0x6b   : > { %v235_v6 = vmul.f32 %v411_v1, %v234_v5  ;;  %v239_v7 = vstv %s238_s26  ;;  %s211_s21 = sld [smem:[#allocation2 + %s210_s3]]  ;;  %s219_s6 = sadd.s32 6, %s938_s29 }
  0x6c   : > { %v240_v8 = vmul.f32 %v412_v2, %v239_v7  ;;  %s215_s1 = sld [smem:[#allocation2 + %s214_s7]]  ;;  %v244_v10 = vstv %s243_s22  ;;  %s206_s25 = sadd.s32 3, %s938_s29 }
  0x6d   : > { %v236_v9 = vadd.f32 %v235_v6, %v231_v4  ;;  %s202_s30 = sld [smem:[#allocation2 + %s201_s5]]  ;;  %v262_v12 = vstv %s259_s4  ;;  %s224_s26 = sadd.s32 7, %s938_s29 }
  0x6e   : > { %s220_s12 = sld [smem:[#allocation2 + %s219_s6]]  ;;  %v194_v15 = vstv %s949_s28  ;;  %s423_s0 = smul.u32 6, %s701_s15 }
  0x6f   : > { %v241_v11 = vadd.f32 %v240_v8, %v236_v9  ;;  %v264_v14 = vstv %s261_s23  ;;  %v195_v22 = vmul.f32 %v194_v15, %v188_v0  ;;  %s207_s5 = sld [smem:[#allocation2 + %s206_s25]] }
  0x70   : > { %v198_v18 = vstv %s197_s20  ;;  %s225_s22 = sld [smem:[#allocation2 + %s224_s26]]  ;;  %s301_s24 = sadd.s32 %s705_s16, %s423_s0 }
  0x71   : > { %v245_v13 = vadd.f32 %v244_v10, %v241_v11  ;;  %v212_v19 = vstv %s211_s21  ;;  %v199_v23 = vmul.f32 %v411_v1, %v198_v18  ;;  %s417_s28 = sshll.u32 %s301_s24, 7  ;;  %s725_s21 = smov [#allocation7]  }
  0x72   : > { %v216_v20 = vstv %s215_s1  ;;  %v213_v24 = vmul.f32 %v212_v19, %v188_v0  ;;  %s184_s1 = sand.u32 1, %s681_s10   ;;  %s967_s23 = scalar_lea.hbm %s1034_s2, %s417_s28 }
  0x73   : > { %v246_v16 = vadd.f32 1e-08, %v245_v13  ;;  %v263_v17 = vmul.f32 %v262_v12, %v245_v13  ;;  %v217_v25 = vmul.f32 %v411_v1, %v216_v20  ;;  %v203_v26 = vstv %s202_s30  ;;  %s422_s29 = smul.u32 24, %s184_s1  ;;  %s971_s20 = scalar_lea.sflag [#allocation4], %s184_s1 }
  0x74   : > { %v221_v27 = vstv %s220_s12  ;;  %v200_v28 = vadd.f32 %v199_v23, %v195_v22  ;;  %v204_v29 = vmul.f32 %v412_v2, %v203_v26  ;;  %v251_v34 = vand.u32 2147483647, %v245_v13  ;;  %s595_s6 = sshll.u32 %s725_s21, 4  ;;  %s596_s6 = int_to_ptr.vmem [resolvable:$false] %s595_s6 }
  0x75   : > { %544 = vrcp.f32 %v246_v16  ;;  %v265_v21 = vadd.f32 %v264_v14, %v263_v17  ;;  %v218_v30 = vadd.f32 %v217_v25, %v213_v24  ;;  %v222_v31 = vmul.f32 %v412_v2, %v221_v27  ;;  %s186_s4 = scalar_lea.vmem [#allocation7], %s422_s29  ;;  %s597_s30 = scalar_lea.vmem %s596_s6, 768 }
  0x76   : > { %v205_v33 = vadd.f32 %v204_v29, %v200_v28  ;;  %v208_v36 = vstv %s207_s5  ;;  %v226_v38 = vstv %s225_s22  ;;  %vm252_vm2 = vcmp.gt.f32.partialorder %v251_v34, 1e-08  ;;  %s304_s3 = sshll.u32 %s186_s4, 4  ;;  %s962_s3 = int_to_ptr.vmem [resolvable:$true] %s304_s3 }
  0x77   : > { %546 = vrsqrt.f32 %v265_v21  ;;  %v223_v35 = vadd.f32 %v222_v31, %v218_v30  ;;  %vm268_vm0 = vcmp.eq.f32.partialorder %v265_v21, inf  ;;  %v271_v40 = vand.u32 2147483648, %v265_v21  ;;  %s591_s7 = scalar_lea.vmem %s962_s3, 384  ;;  %p598_p11 = scmp.lt.s32.totalorder %s962_s3, %s596_s6 }
  0x78   : > { %vm270_vm1 = vcmp.eq.f32.partialorder %v265_v21, 0.0  ;;  %v209_v43 = vadd.f32 %v208_v36, %v205_v33  ;;  %p592_p6 = scmp.ne.s32.totalorder %s962_s3, %s591_s7  ;;  %p599_p5 = scmp.lt.s32.totalorder %s597_s30, %s591_s7 }
  0x79   : > { %v227_v44 = vadd.f32 %v226_v38, %v223_v35 }
  0x7a   : > { %p593_p0 = pnand %p592_p6, %p1063_p10  ;;  %p600_p7 = por %p599_p5, %p598_p11 }
  0x7c   : > { %p594_p9 = pneg %p593_p0 }
  0x7e   : > { %p601_p8 = pnand %p600_p7, %p594_p9 }
  0x7f   : > { %v545_v32 = vpop.eup %544 }
  0x80   : > { %v248_v37 = vmul.f32 %v545_v32, %v246_v16 }
  0x81   : > { %v547_v39 = vpop.eup %546 }
  0x82   : > { %v249_v41 = vsub.f32 2.0, %v248_v37  ;;  %v267_v42 = vmul.f32 %v547_v39, %v265_v21 }
  0x84   : > { %v250_v45 = vmul.f32 %v545_v32, %v249_v41  ;;  %v269_v46 = vsel %vm268_vm0, %v265_v21, %v267_v42 }
  0x85   : > { %v272_v47 = vsel %vm270_vm1, %v271_v40, %v269_v46 }
  0x86   : > { %v253_v48 = vsel %vm252_vm2, %v250_v45, 1.0  ;;  %v273_v49 = vmul.f32 0.015873017, %v272_v47 }
  0x87   : > { %v254_v50 = vmul.f32 %v253_v48, %v209_v43  ;;  %v256_v51 = vmul.f32 %v253_v48, %v227_v44 }
  0x88   : > { %v274_v52 = vadd.f32 -1.0158731, %v273_v49 }
  0x89   : > { %v413_v53 = vadd.f32 -1.0, %v254_v50  ;;  %v414_v54 = vadd.f32 -1.0, %v256_v51 }
  0x8a   : > { %vm284_vm3 = vweird.f32 %v274_v52 }
  0x8b   : > { %vm275_vm4 = vweird.f32 %v413_v53  ;;  %vm279_vm5 = vweird.f32 %v414_v54  ;;  %vm285_vm7 = vmxor %vm284_vm3, %vm724_vm6 }
  0x8c   : > { %vm276_vm8 = vmxor %vm275_vm4, %vm724_vm6  ;;  %v286_v55 = vsel %vm285_vm7, %v274_v52, -2.0 }
  0x8d   : > { %v277_v56 = vsel %vm276_vm8, %v413_v53, -2.0  ;;  %vm280_vm9 = vmxor %vm279_vm5, %vm724_vm6  ;;  %416 = vst [vmem:[%s186_s4 + $0x10] sm:$0xff] %v286_v55 }
  0x8e   : > { %278 = vst [vmem:[%s186_s4] sm:$0xff] %v277_v56  ;;  %v281_v57 = vsel %vm280_vm9, %v414_v54, -2.0 }
  0x8f   : > { %415 = vst [vmem:[%s186_s4 + $0x8] sm:$0xff] %v281_v57 }
  0x90   : > { %604 = shalt.err (!%p601_p8)
}
  0x91   : > { %s605_s12 = scalar_lea.hbm %s967_s23, 384  ;;  %s609_s5 = scalar_lea.hbm %s1034_s2, 1536 }
  0x92   : > { %p606_p4 = scmp.ne.s32.totalorder %s967_s23, %s605_s12  ;;  %p610_p2 = scmp.lt.u32.totalorder %s967_s23, %s1034_s2 }
  0x93   : > { %p611_p12 = scmp.lt.u32.totalorder %s609_s5, %s605_s12  ;;  %p613_p6 = scmp.lt.u32.totalorder %s605_s12, %s967_s23 }
  0x94   : > { %p607_p13 = pnand %p606_p4, %p1063_p10 }
  0x95   : > { %p612_p3 = por %p611_p12, %p610_p2 }
  0x96   : > { %p608_p1 = pneg %p607_p13 }
  0x97   : > { %p614_p0 = por %p613_p6, %p612_p3 }
  0x99   : > { %p615_p9 = pnand %p614_p0, %p608_p1 }
  0x9b   : > { %618 = shalt.err (!%p615_p9)
}
  0x9c   : > { %s726_s29 = smov 128   ;;  %s727_s0 = smov 256  }
  0x9d   : > { %s728_s24 = smov 8  }
  0x9e   : > { %430 = dma.vmem_to_hbm [thread:$0]  (%p1063_p10), %s962_s3, 384, %s967_s23, %s971_s20, %s726_s29, %s727_s0, %s728_s24  }
  0x9f PF: > { %s1064_s4 = sld [smem:[#allocation12_spill]]  ;;  %p447_p11 = scmp.ge.s32.totalorder %s717_s19, 2 }
  0xa0   : > { %s319_s28 = sand.u32 1, %s677_s9  }
  0xa1   : > { %s320_s15 = scalar_lea.sflag [#allocation4], %s319_s28 }
  0xa5   : > { %p1065_p5 = scmp.ne.s32.totalorder %s1064_s4, 0 }
  0xa7   : > { %p441_p7 = pnand %p447_p11, %p1065_p5 }
  0xa9   : > { %672 = dma.done.wait (!%p441_p7), %s320_s15, 384  }
  0xaa   : > { %674 = vsyncadd (!%p441_p7), %s320_s15, 4294966912  ;;  %s19_s19 = sadd.s32 1, %s717_s19   ;;  %s1066_s15 = sld [smem:[#allocation11_spill]] }
  0xab   : > { %p16_p8 = scmp.ge.s32.totalorder %s19_s19, 6   ;;  %s1067_s27 = sld [smem:[#allocation13_spill]] }
  0xac   : > { %s1068_s3 = sld [smem:[#allocation14_spill]]  ;;  %s1069_s9 = smov %s681_s10 }
  0xad   : > { %s1070_s10 = smov %s685_s11  ;;  %s1071_s11 = smov %s896_s8 }
  0xae   : > { %s1072_s12 = smov %s693_s13  ;;  %s1073_s13 = smov %s697_s14 }
  0xaf   : > { %s1074_s14 = smov %s891_s17  ;;  %s1075_s16 = smov %s713_s18 }
  0xb0   :  { %18 = sbr.rel (!%p16_p8) target bundleno = 13 (0xd), region = 82 }
  0xb1   : > { %s1076_s17 = smov %s1067_s27 }
  0xb2   : > { %s1077_s18 = smov %s1068_s3 }
  0xb7   :  { %325 = vsyncpa [#allocation3], 1 }
  0xb8   :  { %327 = vsyncpa [#allocation3 + $0x1], 1 }
  0xb9   :  { %328 = vsyncpa [#allocation4], 1 }
  0xba   :  { %330 = vsyncpa [#allocation4 + $0x1], 1 }
  0xbb   :  { %331 = vsyncpa [#allocation5], 1 }
  0xbc   :  { %333 = vsyncpa [#allocation5 + $0x1], 1 }

</bundles_post_ra>
